<compile_context>
chip_gen: v7x
topology: tpu7x:2x2x1
jax: 0.10.0
libtpu: 0.0.40
codegen_flags: <defaults>
</compile_context>

<pallas_src>
import functools

import jax
import jax.numpy as jnp
from jax.experimental import pallas as pl
from jax.experimental.pallas import tpu as pltpu

LANE = 128


def _round_up(x, m):
    return (x + m - 1) // m * m


# ----------------------------- Pallas kernel --------------------------------
def vrl3_actor_kernel(
    obs_ref,           # [Bb, R_pad]       (streamed over the batch grid)
    wt_ref, bt_ref,    # trunk linear      [R_pad, F_pad], [1, F_pad]
    g_ref, be_ref,     # layernorm g/b     [1, F_pad] (zero in padded lanes)
    w1_ref, b1_ref,    # mlp layer 1       [F_pad, H_pad], [1, H_pad]
    w2_ref, b2_ref,    # mlp layer 2       [H_pad, H_pad], [1, H_pad]
    w3_ref, b3_ref,    # mlp output        [H_pad, A_pad], [1, A_pad]
    mu_ref,            # out [Bb, A_pad]   (lane-dense; sliced to A in wrapper)
    *,
    feature_dim,       # true (unpadded) feature_dim for LayerNorm statistics
):
    obs = obs_ref[...]

    # ---- trunk: Linear + LayerNorm over the first `feature_dim` lanes ----
    # Padded lanes of h are exactly zero (padded weight cols / bias are zero),
    # so sum over all lanes == sum over true lanes.
    h = jnp.dot(obs, wt_ref[...], preferred_element_type=jnp.float32) + bt_ref[...]
    inv_f = 1.0 / feature_dim
    mean = jnp.sum(h, axis=-1, keepdims=True) * inv_f
    lane = jax.lax.broadcasted_iota(jnp.int32, h.shape, 1)
    centered = jnp.where(lane < feature_dim, h - mean, 0.0)
    var = jnp.sum(centered * centered, axis=-1, keepdims=True) * inv_f
    inv = jax.lax.rsqrt(var + 1e-5)
    h = centered * inv * g_ref[...] + be_ref[...]   # padded lanes stay 0 (gamma=beta=0)

    # ---- actor MLP (depth=2, relu) ----
    x = jnp.dot(h, w1_ref[...], preferred_element_type=jnp.float32) + b1_ref[...]
    x = jnp.maximum(x, 0.0)
    x = jnp.dot(x, w2_ref[...], preferred_element_type=jnp.float32) + b2_ref[...]
    x = jnp.maximum(x, 0.0)
    mu = jnp.dot(x, w3_ref[...], preferred_element_type=jnp.float32) + b3_ref[...]

    # ---- tanh (action_scale=1, action_shift=0) ----
    mu_ref[...] = jnp.tanh(mu)


# ------------------------------ wrapper --------------------------------------
@functools.partial(jax.jit, static_argnames=("batch_block",))
def vrl3_actor_forward(params, obs, std_scalar, *, batch_block=256):
    B, R = obs.shape
    F = params["wt"].shape[1]
    H = params["w1"].shape[1]
    A = params["w3"].shape[1]

    # Lane-pad every dim to a multiple of 128; batch block sized for the grid.
    R_p = _round_up(R, LANE)
    F_p = _round_up(F, LANE)
    H_p = _round_up(H, LANE)
    A_p = _round_up(A, LANE)
    Bb = min(_round_up(batch_block, 8), _round_up(B, 8))
    B_p = _round_up(B, Bb)

    def pad2(a, rows, cols):
        a = jnp.asarray(a, jnp.float32)
        return jnp.pad(a, ((0, rows - a.shape[0]), (0, cols - a.shape[1])))

    obs_p = pad2(obs, B_p, R_p)
    wt = pad2(params["wt"], R_p, F_p)
    bt = pad2(params["bt"], 1, F_p)
    g = pad2(params["gamma"], 1, F_p)
    be = pad2(params["beta"], 1, F_p)
    w1 = pad2(params["w1"], F_p, H_p)
    b1 = pad2(params["b1"], 1, H_p)
    w2 = pad2(params["w2"], H_p, H_p)
    b2 = pad2(params["b2"], 1, H_p)
    w3 = pad2(params["w3"], H_p, A_p)
    b3 = pad2(params["b3"], 1, A_p)

    def resident(shape):
        # Weights / biases: same block index every grid step -> stay VMEM-resident.
        return pl.BlockSpec(shape, lambda i: (0, 0))

    mu_p = pl.pallas_call(
        functools.partial(vrl3_actor_kernel, feature_dim=F),
        out_shape=jax.ShapeDtypeStruct((B_p, A_p), jnp.float32),
        grid=(B_p // Bb,),
        in_specs=[
            pl.BlockSpec((Bb, R_p), lambda i: (i, 0)),   # obs streams over batch
            resident((R_p, F_p)), resident((1, F_p)),    # trunk linear
            resident((1, F_p)), resident((1, F_p)),      # layernorm gamma/beta
            resident((F_p, H_p)), resident((1, H_p)),    # mlp 1
            resident((H_p, H_p)), resident((1, H_p)),    # mlp 2
            resident((H_p, A_p)), resident((1, A_p)),    # mlp out
        ],
        out_specs=pl.BlockSpec((Bb, A_p), lambda i: (i, 0)),
        compiler_params=pltpu.CompilerParams(
            dimension_semantics=("parallel",)),          # v7x: batch across 2 TCs
    )(obs_p, wt, bt, g, be, w1, b1, w2, b2, w3, b3)

    mu = mu_p[:B, :A]
    # std is a pure broadcast — keep it in the wrapper, not in the kernel.
    std_out = jnp.full((B, A), jnp.asarray(std_scalar, jnp.float32))
    return mu, std_out


# --------------------------- parameter init -----------------------------------
def orthogonal(key, in_dim, out_dim, gain=1.0):
    # Mimics torch.nn.init.orthogonal_ on a (out_dim, in_dim) weight, then
    # stores it transposed as (in_dim, out_dim) for y = x @ W.
    a = jax.random.normal(key, (max(in_dim, out_dim), min(in_dim, out_dim)), jnp.float32)
    q, r = jnp.linalg.qr(a)
    q = q * jnp.sign(jnp.diag(r))
    w = q[:in_dim, :out_dim] if in_dim >= out_dim else q[:out_dim, :in_dim].T
    return gain * w.astype(jnp.float32)


def make_params(key, repr_dim, feature_dim, hidden_dim, action_dim):
    ks = jax.random.split(key, 4)
    return {
        # trunk linear + layernorm
        "wt": orthogonal(ks[0], repr_dim, feature_dim),
        "bt": jnp.zeros((1, feature_dim), jnp.float32),
        "gamma": jnp.ones((1, feature_dim), jnp.float32),
        "beta": jnp.zeros((1, feature_dim), jnp.float32),
        # MLP: Linear(F,H) ReLU Linear(H,H) ReLU Linear(H,A)   (depth=2)
        "w1": orthogonal(ks[1], feature_dim, hidden_dim),
        "b1": jnp.zeros((1, hidden_dim), jnp.float32),
        "w2": orthogonal(ks[2], hidden_dim, hidden_dim),
        "b2": jnp.zeros((1, hidden_dim), jnp.float32),
        "w3": orthogonal(ks[3], hidden_dim, action_dim, gain=1.0),
        "b3": jnp.zeros((1, action_dim), jnp.float32),
    }


# -------------------------------- main -----------------------------------------
if __name__ == "__main__":
    B, REPR_DIM, FEATURE_DIM, HIDDEN_DIM, ACTION_DIM = 8, 64, 32, 32, 6
    STD = 0.1

    key = jax.random.PRNGKey(0)
    k_obs, k_params = jax.random.split(key)
    obs = jax.random.normal(k_obs, (B, REPR_DIM), jnp.float32)
    params = make_params(k_params, REPR_DIM, FEATURE_DIM, HIDDEN_DIM, ACTION_DIM)

    mu, std_out = vrl3_actor_forward(params, obs, STD)
    jax.block_until_ready((mu, std_out))

    # Pure-JAX reference check of the same forward pass (unpadded math).
    def ref(p, o, std):
        h = o @ p["wt"] + p["bt"]
        m = h.mean(-1, keepdims=True)
        v = ((h - m) ** 2).mean(-1, keepdims=True)
        h = (h - m) / jnp.sqrt(v + 1e-5) * p["gamma"] + p["beta"]
        x = jnp.maximum(h @ p["w1"] + p["b1"], 0.0)
        x = jnp.maximum(x @ p["w2"] + p["b2"], 0.0)
        mu_ = jnp.tanh(x @ p["w3"] + p["b3"])
        return mu_, jnp.ones_like(mu_) * std

    mu_ref, std_ref = ref(params, obs, STD)
    assert mu.shape == (B, ACTION_DIM) and std_out.shape == (B, ACTION_DIM)
    assert jnp.allclose(mu, mu_ref, atol=1e-5), "mu mismatch"
    assert jnp.allclose(std_out, std_ref, atol=1e-6), "std mismatch"

    print("KERNEL_OK")
</pallas_src>

<mosaic_0001>
module attributes {stable_mosaic.version = 11 : i64} {
  func.func @vrl3_actor_kernel(%arg0: i32, %arg1: memref<8x128xf32, #tpu.memory_space<vmem>>, %arg2: memref<128x128xf32, #tpu.memory_space<vmem>>, %arg3: memref<1x128xf32, #tpu.memory_space<vmem>>, %arg4: memref<1x128xf32, #tpu.memory_space<vmem>>, %arg5: memref<1x128xf32, #tpu.memory_space<vmem>>, %arg6: memref<128x128xf32, #tpu.memory_space<vmem>>, %arg7: memref<1x128xf32, #tpu.memory_space<vmem>>, %arg8: memref<128x128xf32, #tpu.memory_space<vmem>>, %arg9: memref<1x128xf32, #tpu.memory_space<vmem>>, %arg10: memref<128x128xf32, #tpu.memory_space<vmem>>, %arg11: memref<1x128xf32, #tpu.memory_space<vmem>>, %arg12: memref<8x128xf32, #tpu.memory_space<vmem>>) attributes {dimension_semantics = [#tpu.dimension_semantics<parallel>], iteration_bounds = array<i64: 1>, scalar_prefetch = 0 : i64, scratch_operands = 0 : i64, tpu.core_type = #tpu.core_type<tc>, window_params = [{transform_indices = @transform_0, window_bounds = array<i64: 8, 128>}, {pipeline_mode = #tpu.pipeline_mode<synchronous>, transform_indices = @transform_1, window_bounds = array<i64: 128, 128>}, {pipeline_mode = #tpu.pipeline_mode<synchronous>, transform_indices = @transform_2, window_bounds = array<i64: 1, 128>}, {pipeline_mode = #tpu.pipeline_mode<synchronous>, transform_indices = @transform_3, window_bounds = array<i64: 1, 128>}, {pipeline_mode = #tpu.pipeline_mode<synchronous>, transform_indices = @transform_4, window_bounds = array<i64: 1, 128>}, {pipeline_mode = #tpu.pipeline_mode<synchronous>, transform_indices = @transform_5, window_bounds = array<i64: 128, 128>}, {pipeline_mode = #tpu.pipeline_mode<synchronous>, transform_indices = @transform_6, window_bounds = array<i64: 1, 128>}, {pipeline_mode = #tpu.pipeline_mode<synchronous>, transform_indices = @transform_7, window_bounds = array<i64: 128, 128>}, {pipeline_mode = #tpu.pipeline_mode<synchronous>, transform_indices = @transform_8, window_bounds = array<i64: 1, 128>}, {pipeline_mode = #tpu.pipeline_mode<synchronous>, transform_indices = @transform_9, window_bounds = array<i64: 128, 128>}, {pipeline_mode = #tpu.pipeline_mode<synchronous>, transform_indices = @transform_10, window_bounds = array<i64: 1, 128>}, {transform_indices = @transform_11, window_bounds = array<i64: 8, 128>}]} {
    %c0 = arith.constant 0 : index
    %c0_0 = arith.constant 0 : index
    %0 = vector.load %arg1[%c0, %c0_0] : memref<8x128xf32, #tpu.memory_space<vmem>>, vector<8x128xf32>
    %c0_1 = arith.constant 0 : index
    %c0_2 = arith.constant 0 : index
    %1 = vector.load %arg2[%c0_1, %c0_2] : memref<128x128xf32, #tpu.memory_space<vmem>>, vector<128x128xf32>
    %cst = arith.constant dense<0.000000e+00> : vector<8x128xf32>
    %2 = tpu.matmul %0, %1, %cst {dimension_numbers = #tpu.dot_dimension_numbers<[1], [0], [0], [1], [0, 0, 1, 1], [], []>} : vector<8x128xf32>, vector<128x128xf32>, vector<8x128xf32> -> vector<8x128xf32>
    %c0_3 = arith.constant 0 : index
    %c0_4 = arith.constant 0 : index
    %3 = vector.load %arg3[%c0_3, %c0_4] : memref<1x128xf32, #tpu.memory_space<vmem>>, vector<1x128xf32>
    %4 = vector.broadcast %3 : vector<1x128xf32> to vector<8x128xf32>
    %5 = arith.addf %2, %4 : vector<8x128xf32>
    %cst_5 = arith.constant dense<0.000000e+00> : vector<8xf32>
    %6 = vector.multi_reduction <add>, %5, %cst_5 [1] : vector<8x128xf32> to vector<8xf32>
    %7 = vector.shape_cast %6 : vector<8xf32> to vector<8x1xf32>
    %cst_6 = arith.constant 3.125000e-02 : f32
    %8 = vector.broadcast %cst_6 : f32 to vector<8x1xf32>
    %9 = arith.mulf %7, %8 : vector<8x1xf32>
    %10 = tpu.iota {dimensions = array<i32: 1>} : vector<8x128xi32>
    %c32_i32 = arith.constant 32 : i32
    %11 = vector.broadcast %c32_i32 : i32 to vector<8x128xi32>
    %12 = arith.cmpi slt, %10, %11 : vector<8x128xi32>
    %13 = vector.broadcast %9 : vector<8x1xf32> to vector<8x128xf32>
    %14 = arith.subf %5, %13 : vector<8x128xf32>
    %cst_7 = arith.constant 0.000000e+00 : f32
    %15 = vector.broadcast %cst_7 : f32 to vector<8x128xf32>
    %16 = arith.select %12, %14, %15 : vector<8x128xi1>, vector<8x128xf32>
    %17 = arith.mulf %16, %16 : vector<8x128xf32>
    %cst_8 = arith.constant dense<0.000000e+00> : vector<8xf32>
    %18 = vector.multi_reduction <add>, %17, %cst_8 [1] : vector<8x128xf32> to vector<8xf32>
    %19 = vector.shape_cast %18 : vector<8xf32> to vector<8x1xf32>
    %cst_9 = arith.constant 3.125000e-02 : f32
    %20 = vector.broadcast %cst_9 : f32 to vector<8x1xf32>
    %21 = arith.mulf %19, %20 : vector<8x1xf32>
    %cst_10 = arith.constant 9.99999974E-6 : f32
    %22 = vector.broadcast %cst_10 : f32 to vector<8x1xf32>
    %23 = arith.addf %21, %22 : vector<8x1xf32>
    %24 = math.rsqrt %23 : vector<8x1xf32>
    %25 = vector.broadcast %24 : vector<8x1xf32> to vector<8x128xf32>
    %26 = arith.mulf %16, %25 : vector<8x128xf32>
    %c0_11 = arith.constant 0 : index
    %c0_12 = arith.constant 0 : index
    %27 = vector.load %arg4[%c0_11, %c0_12] : memref<1x128xf32, #tpu.memory_space<vmem>>, vector<1x128xf32>
    %28 = vector.broadcast %27 : vector<1x128xf32> to vector<8x128xf32>
    %29 = arith.mulf %26, %28 : vector<8x128xf32>
    %c0_13 = arith.constant 0 : index
    %c0_14 = arith.constant 0 : index
    %30 = vector.load %arg5[%c0_13, %c0_14] : memref<1x128xf32, #tpu.memory_space<vmem>>, vector<1x128xf32>
    %31 = vector.broadcast %30 : vector<1x128xf32> to vector<8x128xf32>
    %32 = arith.addf %29, %31 : vector<8x128xf32>
    %c0_15 = arith.constant 0 : index
    %c0_16 = arith.constant 0 : index
    %33 = vector.load %arg6[%c0_15, %c0_16] : memref<128x128xf32, #tpu.memory_space<vmem>>, vector<128x128xf32>
    %cst_17 = arith.constant dense<0.000000e+00> : vector<8x128xf32>
    %34 = tpu.matmul %32, %33, %cst_17 {dimension_numbers = #tpu.dot_dimension_numbers<[1], [0], [0], [1], [0, 0, 1, 1], [], []>} : vector<8x128xf32>, vector<128x128xf32>, vector<8x128xf32> -> vector<8x128xf32>
    %c0_18 = arith.constant 0 : index
    %c0_19 = arith.constant 0 : index
    %35 = vector.load %arg7[%c0_18, %c0_19] : memref<1x128xf32, #tpu.memory_space<vmem>>, vector<1x128xf32>
    %36 = vector.broadcast %35 : vector<1x128xf32> to vector<8x128xf32>
    %37 = arith.addf %34, %36 : vector<8x128xf32>
    %cst_20 = arith.constant 0.000000e+00 : f32
    %38 = vector.broadcast %cst_20 : f32 to vector<8x128xf32>
    %39 = arith.maximumf %37, %38 : vector<8x128xf32>
    %c0_21 = arith.constant 0 : index
    %c0_22 = arith.constant 0 : index
    %40 = vector.load %arg8[%c0_21, %c0_22] : memref<128x128xf32, #tpu.memory_space<vmem>>, vector<128x128xf32>
    %cst_23 = arith.constant dense<0.000000e+00> : vector<8x128xf32>
    %41 = tpu.matmul %39, %40, %cst_23 {dimension_numbers = #tpu.dot_dimension_numbers<[1], [0], [0], [1], [0, 0, 1, 1], [], []>} : vector<8x128xf32>, vector<128x128xf32>, vector<8x128xf32> -> vector<8x128xf32>
    %c0_24 = arith.constant 0 : index
    %c0_25 = arith.constant 0 : index
    %42 = vector.load %arg9[%c0_24, %c0_25] : memref<1x128xf32, #tpu.memory_space<vmem>>, vector<1x128xf32>
    %43 = vector.broadcast %42 : vector<1x128xf32> to vector<8x128xf32>
    %44 = arith.addf %41, %43 : vector<8x128xf32>
    %cst_26 = arith.constant 0.000000e+00 : f32
    %45 = vector.broadcast %cst_26 : f32 to vector<8x128xf32>
    %46 = arith.maximumf %44, %45 : vector<8x128xf32>
    %c0_27 = arith.constant 0 : index
    %c0_28 = arith.constant 0 : index
    %47 = vector.load %arg10[%c0_27, %c0_28] : memref<128x128xf32, #tpu.memory_space<vmem>>, vector<128x128xf32>
    %cst_29 = arith.constant dense<0.000000e+00> : vector<8x128xf32>
    %48 = tpu.matmul %46, %47, %cst_29 {dimension_numbers = #tpu.dot_dimension_numbers<[1], [0], [0], [1], [0, 0, 1, 1], [], []>} : vector<8x128xf32>, vector<128x128xf32>, vector<8x128xf32> -> vector<8x128xf32>
    %c0_30 = arith.constant 0 : index
    %c0_31 = arith.constant 0 : index
    %49 = vector.load %arg11[%c0_30, %c0_31] : memref<1x128xf32, #tpu.memory_space<vmem>>, vector<1x128xf32>
    %50 = vector.broadcast %49 : vector<1x128xf32> to vector<8x128xf32>
    %51 = arith.addf %48, %50 : vector<8x128xf32>
    %52 = math.tanh %51 : vector<8x128xf32>
    %c0_32 = arith.constant 0 : index
    %c0_33 = arith.constant 0 : index
    %53 = vector.load %arg12[%c0_32, %c0_33] : memref<8x128xf32, #tpu.memory_space<vmem>>, vector<8x128xf32>
    tpu.vector_store %arg12[%c0_32, %c0_33], %52 {strides = array<i32>} : memref<8x128xf32, #tpu.memory_space<vmem>>, vector<8x128xf32>,
    return
  }
  func.func @transform_0(%arg0: i32) -> (i32, i32) {
    %c0_i32 = arith.constant 0 : i32
    %c0_i32_0 = arith.constant 0 : i32
    return %arg0, %c0_i32 : i32, i32
  }
  func.func @transform_1(%arg0: i32) -> (i32, i32) {
    %c0_i32 = arith.constant 0 : i32
    %c0_i32_0 = arith.constant 0 : i32
    %c0_i32_1 = arith.constant 0 : i32
    return %c0_i32, %c0_i32_0 : i32, i32
  }
  func.func @transform_2(%arg0: i32) -> (i32, i32) {
    %c0_i32 = arith.constant 0 : i32
    %c0_i32_0 = arith.constant 0 : i32
    %c0_i32_1 = arith.constant 0 : i32
    return %c0_i32, %c0_i32_0 : i32, i32
  }
  func.func @transform_3(%arg0: i32) -> (i32, i32) {
    %c0_i32 = arith.constant 0 : i32
    %c0_i32_0 = arith.constant 0 : i32
    %c0_i32_1 = arith.constant 0 : i32
    return %c0_i32, %c0_i32_0 : i32, i32
  }
  func.func @transform_4(%arg0: i32) -> (i32, i32) {
    %c0_i32 = arith.constant 0 : i32
    %c0_i32_0 = arith.constant 0 : i32
    %c0_i32_1 = arith.constant 0 : i32
    return %c0_i32, %c0_i32_0 : i32, i32
  }
  func.func @transform_5(%arg0: i32) -> (i32, i32) {
    %c0_i32 = arith.constant 0 : i32
    %c0_i32_0 = arith.constant 0 : i32
    %c0_i32_1 = arith.constant 0 : i32
    return %c0_i32, %c0_i32_0 : i32, i32
  }
  func.func @transform_6(%arg0: i32) -> (i32, i32) {
    %c0_i32 = arith.constant 0 : i32
    %c0_i32_0 = arith.constant 0 : i32
    %c0_i32_1 = arith.constant 0 : i32
    return %c0_i32, %c0_i32_0 : i32, i32
  }
  func.func @transform_7(%arg0: i32) -> (i32, i32) {
    %c0_i32 = arith.constant 0 : i32
    %c0_i32_0 = arith.constant 0 : i32
    %c0_i32_1 = arith.constant 0 : i32
    return %c0_i32, %c0_i32_0 : i32, i32
  }
  func.func @transform_8(%arg0: i32) -> (i32, i32) {
    %c0_i32 = arith.constant 0 : i32
    %c0_i32_0 = arith.constant 0 : i32
    %c0_i32_1 = arith.constant 0 : i32
    return %c0_i32, %c0_i32_0 : i32, i32
  }
  func.func @transform_9(%arg0: i32) -> (i32, i32) {
    %c0_i32 = arith.constant 0 : i32
    %c0_i32_0 = arith.constant 0 : i32
    %c0_i32_1 = arith.constant 0 : i32
    return %c0_i32, %c0_i32_0 : i32, i32
  }
  func.func @transform_10(%arg0: i32) -> (i32, i32) {
    %c0_i32 = arith.constant 0 : i32
    %c0_i32_0 = arith.constant 0 : i32
    %c0_i32_1 = arith.constant 0 : i32
    return %c0_i32, %c0_i32_0 : i32, i32
  }
  func.func @transform_11(%arg0: i32) -> (i32, i32) {
    %c0_i32 = arith.constant 0 : i32
    %c0_i32_0 = arith.constant 0 : i32
    return %arg0, %c0_i32 : i32, i32
  }
}

</mosaic_0001>

<bundles_post_ra>
// kernel: vrl3_actor_forward.1
= control target key start
LH: loop header
LB: loop body
LE: loop exit
PB: predicated region body
PF: predicated region fallthrough
CT: control target
= control target key end

     0   :  { %v803_v3 = vmov 0.0|0.0   ;;  %vm804_vm0 = vmmov 0   ;;  %v805_v6 = vmov 0.0   ;;  %s1137_s0 = inlined_call_operand.vmem [shape: f32[8,128], index: 0, kind: input, shape index: {}]   ;;  %s1138_s1 = inlined_call_operand.vmem [shape: f32[128,128], index: 1, kind: input, shape index: {}]   ;;  %s1139_s2 = inlined_call_operand.vmem [shape: f32[1,128], index: 2, kind: input, shape index: {}]   ;;  %s1140_s3 = inlined_call_operand.vmem [shape: f32[1,128], index: 3, kind: input, shape index: {}]   ;;  %s1141_s4 = inlined_call_operand.vmem [shape: f32[1,128], index: 4, kind: input, shape index: {}]   ;;  %s1142_s5 = inlined_call_operand.vmem [shape: f32[128,128], index: 5, kind: input, shape index: {}]   ;;  %s1143_s6 = inlined_call_operand.vmem [shape: f32[1,128], index: 6, kind: input, shape index: {}]   ;;  %s1144_s7 = inlined_call_operand.vmem [shape: f32[128,128], index: 7, kind: input, shape index: {}]   ;;  %s1145_s8 = inlined_call_operand.vmem [shape: f32[1,128], index: 8, kind: input, shape index: {}]   ;;  %s1146_s9 = inlined_call_operand.vmem [shape: f32[128,128], index: 9, kind: input, shape index: {}]   ;;  %s1147_s10 = inlined_call_operand.vmem [shape: f32[1,128], index: 10, kind: input, shape index: {}]   ;;  %s1148_s11 = inlined_call_operand.hbm [shape: f32[8,128], index: 11, kind: output, shape index: {}]  }
   0x1   :  { %v40_v0 = vld [vmem:[%s1138_s1] sm:$0xff]  ;;  %v41_v1 = vld [vmem:[%s1138_s1 + $0x8] sm:$0xff]  ;;  %v42_v2 = vld [vmem:[%s1138_s1 + $0x10] sm:$0xff]  ;;  %675 = vmatprep.subr.bf16.mxu0 %v803_v3  ;;  %567 = vmatprep.mubr.msk.f32.mxu0 %vm804_vm0, %v805_v6 }
   0x2   :  { %v676_v4 = vpack.c.bf16 %v41_v1, %v40_v0  ;;  %v43_v5 = vld [vmem:[%s1138_s1 + $0x18] sm:$0xff]  ;;  %699 = vmatprep.subr.bf16.mxu1 %v803_v3  ;;  %602 = vmatprep.mubr.msk.f32.mxu1 %vm804_vm0, %v805_v6  ;;  %v44_v8 = vld [vmem:[%s1138_s1 + $0x20] sm:$0xff]  ;;  %v45_v9 = vld [vmem:[%s1138_s1 + $0x28] sm:$0xff] }
   0x3   :  { %v679_v7 = vpack.c.bf16 %v43_v5, %v42_v2 }
   0x4   :  { %677 = vmatpush3.bf16.msra.mxu0 %v676_v4 }
   0x5   :  { %678 = vmatprep.subr.bf16.mxu0 %v803_v3 }
   0x6   :  { %16 = vsyncpa [#allocation3], 0  ;;  %v682_v10 = vpack.c.bf16 %v45_v9, %v44_v8  ;;  %v46_v11 = vld [vmem:[%s1138_s1 + $0x30] sm:$0xff]  ;;  %v47_v12 = vld [vmem:[%s1138_s1 + $0x38] sm:$0xff]  ;;  %v136_v40 = vlaneseq }
   0x7   :  { %v685_v13 = vpack.c.bf16 %v47_v12, %v46_v11  ;;  %v48_v14 = vld [vmem:[%s1138_s1 + $0x40] sm:$0xff]  ;;  %v49_v15 = vld [vmem:[%s1138_s1 + $0x48] sm:$0xff]  ;;  %v50_v17 = vld [vmem:[%s1138_s1 + $0x50] sm:$0xff] }
   0x8   :  { %680 = vmatpush3.bf16.msra.mxu0 %v679_v7  ;;  %v688_v16 = vpack.c.bf16 %v49_v15, %v48_v14  ;;  %v51_v18 = vld [vmem:[%s1138_s1 + $0x58] sm:$0xff]  ;;  %v52_v20 = vld [vmem:[%s1138_s1 + $0x60] sm:$0xff]  ;;  %v53_v21 = vld [vmem:[%s1138_s1 + $0x68] sm:$0xff]  ;;  %v137_v41 = vand.u32 127, %v136_v40 }
   0x9   :  { %681 = vmatprep.subr.bf16.mxu0 %v803_v3  ;;  %v691_v19 = vpack.c.bf16 %v51_v18, %v50_v17  ;;  %v694_v22 = vpack.c.bf16 %v53_v21, %v52_v20  ;;  %v54_v23 = vld [vmem:[%s1138_s1 + $0x70] sm:$0xff]  ;;  %v55_v24 = vld [vmem:[%s1138_s1 + $0x78] sm:$0xff]  ;;  %v39_v26 = vld [vmem:[%s1137_s0] sm:$0xff] }
   0xa   :  { %v697_v25 = vpack.c.bf16 %v55_v24, %v54_v23  ;;  %v461_v27 = vld [vmem:[%s1139_s2] ss:$0 sm:$0xff]  ;;  %v165_v32 = vld [vmem:[%s1142_s5 + $0x8] sm:$0xff]  ;;  %v166_v33 = vld [vmem:[%s1142_s5 + $0x10] sm:$0xff]  ;;  %vm138_vm1 = vcmp.lt.s32.totalorder %v137_v41, 32 }
   0xb   :  { %v164_v31 = vld [vmem:[%s1142_s5] sm:$0xff]  ;;  %v167_v35 = vld [vmem:[%s1142_s5 + $0x18] sm:$0xff]  ;;  %v169_v38 = vld [vmem:[%s1142_s5 + $0x28] sm:$0xff] }
   0xc   :  { %683 = vmatpush3.bf16.msra.mxu0 %v682_v10  ;;  %v700_v34 = vpack.c.bf16 %v165_v32, %v164_v31  ;;  %v703_v36 = vpack.c.bf16 %v167_v35, %v166_v33  ;;  %v168_v37 = vld [vmem:[%s1142_s5 + $0x20] sm:$0xff]  ;;  %v170_v47 = vld [vmem:[%s1142_s5 + $0x30] sm:$0xff]  ;;  %v171_v48 = vld [vmem:[%s1142_s5 + $0x38] sm:$0xff] }
   0xd   :  { %684 = vmatprep.subr.bf16.mxu0 %v803_v3  ;;  %v706_v39 = vpack.c.bf16 %v169_v38, %v168_v37  ;;  %v709_v49 = vpack.c.bf16 %v171_v48, %v170_v47  ;;  %v172_v50 = vld [vmem:[%s1142_s5 + $0x40] sm:$0xff]  ;;  %v173_v51 = vld [vmem:[%s1142_s5 + $0x48] sm:$0xff]  ;;  %v174_v53 = vld [vmem:[%s1142_s5 + $0x50] sm:$0xff] }
   0xe   :  { %701 = vmatpush3.bf16.msra.mxu1 %v700_v34  ;;  %v712_v52 = vpack.c.bf16 %v173_v51, %v172_v50  ;;  %v175_v54 = vld [vmem:[%s1142_s5 + $0x58] sm:$0xff]  ;;  %v176_v56 = vld [vmem:[%s1142_s5 + $0x60] sm:$0xff]  ;;  %v177_v57 = vld [vmem:[%s1142_s5 + $0x68] sm:$0xff] }
   0xf   :  { %702 = vmatprep.subr.bf16.mxu1 %v803_v3  ;;  %v715_v55 = vpack.c.bf16 %v175_v54, %v174_v53  ;;  %v718_v58 = vpack.c.bf16 %v177_v57, %v176_v56  ;;  %v178_v59 = vld [vmem:[%s1142_s5 + $0x70] sm:$0xff]  ;;  %v179_v60 = vld [vmem:[%s1142_s5 + $0x78] sm:$0xff]  ;;  %v258_v62 = vld [vmem:[%s1144_s7] sm:$0xff] }
  0x10   :  { %686 = vmatpush3.bf16.msra.mxu0 %v685_v13  ;;  %v721_v61 = vpack.c.bf16 %v179_v60, %v178_v59  ;;  %v259_v63 = vld [vmem:[%s1144_s7 + $0x8] sm:$0xff]  ;;  %v260_v0 = vld [vmem:[%s1144_s7 + $0x10] sm:$0xff]  ;;  %v261_v2 = vld [vmem:[%s1144_s7 + $0x18] sm:$0xff] }
  0x11   :  { %687 = vmatprep.subr.bf16.mxu0 %v803_v3  ;;  %v724_v1 = vpack.c.bf16 %v259_v63, %v258_v62  ;;  %v727_v4 = vpack.c.bf16 %v261_v2, %v260_v0  ;;  %v262_v5 = vld [vmem:[%s1144_s7 + $0x20] sm:$0xff]  ;;  %v263_v7 = vld [vmem:[%s1144_s7 + $0x28] sm:$0xff]  ;;  %v264_v9 = vld [vmem:[%s1144_s7 + $0x30] sm:$0xff] }
  0x12   :  { %704 = vmatpush3.bf16.msra.mxu1 %v703_v36  ;;  %v730_v8 = vpack.c.bf16 %v263_v7, %v262_v5  ;;  %v265_v10 = vld [vmem:[%s1144_s7 + $0x38] sm:$0xff]  ;;  %v266_v12 = vld [vmem:[%s1144_s7 + $0x40] sm:$0xff]  ;;  %v267_v13 = vld [vmem:[%s1144_s7 + $0x48] sm:$0xff] }
  0x13   :  { %705 = vmatprep.subr.bf16.mxu1 %v803_v3  ;;  %v733_v11 = vpack.c.bf16 %v265_v10, %v264_v9  ;;  %v736_v14 = vpack.c.bf16 %v267_v13, %v266_v12  ;;  %v268_v15 = vld [vmem:[%s1144_s7 + $0x50] sm:$0xff]  ;;  %v270_v18 = vld [vmem:[%s1144_s7 + $0x60] sm:$0xff]  ;;  %v273_v31 = vld [vmem:[%s1144_s7 + $0x78] sm:$0xff] }
  0x14   :  { %689 = vmatpush3.bf16.msra.mxu0 %v688_v16  ;;  %v269_v16 = vld [vmem:[%s1144_s7 + $0x58] sm:$0xff]  ;;  %v352_v33 = vld [vmem:[%s1146_s9] sm:$0xff]  ;;  %v353_v34 = vld [vmem:[%s1146_s9 + $0x8] sm:$0xff] }
  0x15   :  { %690 = vmatprep.subr.bf16.mxu0 %v803_v3  ;;  %v739_v17 = vpack.c.bf16 %v269_v16, %v268_v15  ;;  %v748_v35 = vpack.c.bf16 %v353_v34, %v352_v33  ;;  %v355_v36 = vld [vmem:[%s1146_s9 + $0x18] sm:$0xff]  ;;  %v356_v38 = vld [vmem:[%s1146_s9 + $0x20] sm:$0xff]  ;;  %v358_v41 = vld [vmem:[%s1146_s9 + $0x30] sm:$0xff] }
  0x16   :  { %707 = vmatpush3.bf16.msra.mxu1 %v706_v39  ;;  %v357_v39 = vld [vmem:[%s1146_s9 + $0x28] sm:$0xff]  ;;  %v362_v47 = vld [vmem:[%s1146_s9 + $0x50] sm:$0xff]  ;;  %v363_v48 = vld [vmem:[%s1146_s9 + $0x58] sm:$0xff] }
  0x17   :  { %708 = vmatprep.subr.bf16.mxu1 %v803_v3  ;;  %v754_v40 = vpack.c.bf16 %v357_v39, %v356_v38  ;;  %v364_v50 = vld [vmem:[%s1146_s9 + $0x60] sm:$0xff]  ;;  %v365_v51 = vld [vmem:[%s1146_s9 + $0x68] sm:$0xff]  ;;  %v367_v59 = vld [vmem:[%s1146_s9 + $0x78] sm:$0xff] }
  0x18   :  { %692 = vmatpush3.bf16.msra.mxu0 %v691_v19  ;;  %v271_v19 = vld [vmem:[%s1144_s7 + $0x68] sm:$0xff]  ;;  %v464_v53 = vld [vmem:[%s1143_s6] ss:$0 sm:$0xff] }
  0x19   :  { %693 = vmatprep.subr.bf16.mxu0 %v803_v3  ;;  %v742_v20 = vpack.c.bf16 %v271_v19, %v270_v18 }
  0x1a   :  { %710 = vmatpush3.bf16.msra.mxu1 %v709_v49  ;;  %v763_v49 = vpack.c.bf16 %v363_v48, %v362_v47 }
  0x1b   :  { %711 = vmatprep.subr.bf16.mxu1 %v803_v3 }
  0x1c   :  { %695 = vmatpush3.bf16.msra.mxu0 %v694_v22 }
  0x1d   :  { %696 = vmatprep.subr.bf16.mxu0 %v803_v3 }
  0x1e   :  { %713 = vmatpush3.bf16.msra.mxu1 %v712_v52  ;;  %v766_v52 = vpack.c.bf16 %v365_v51, %v364_v50 }
  0x1f   :  { %714 = vmatprep.subr.bf16.mxu1 %v803_v3 }
  0x20   :  { %698 = vmatpush3.bf16.msra.mxu0 %v697_v25  ;;  %v462_v25 = vld [vmem:[%s1140_s3] ss:$0 sm:$0xff] }
  0x21   :  { %723 = vmatprep.subr.bf16.mxu0 %v803_v3 }
  0x22   :  { %716 = vmatpush3.bf16.msra.mxu1 %v715_v55 }
  0x23   :  { %568 = vmatmul.mubr.f32.vlgmr.msra.gmra.mrb[0].mxu0 %v39_v26  ;;  %717 = vmatprep.subr.bf16.mxu1 %v803_v3 }
  0x24   :  { %637 = vmatprep.mubr.msk.f32.mxu0 %vm804_vm0, %v805_v6  ;;  %725 = vmatpush3.bf16.msra.mxu0 %v724_v1  ;;  %v466_v1 = vld [vmem:[%s1147_s10] ss:$0 sm:$0xff] }
  0x25   :  { %726 = vmatprep.subr.bf16.mxu0 %v803_v3 }
  0x26   :  { %719 = vmatpush3.bf16.msra.mxu1 %v718_v58  ;;  %v366_v58 = vld [vmem:[%s1146_s9 + $0x70] sm:$0xff] }
  0x27   :  { %720 = vmatprep.subr.bf16.mxu1 %v803_v3  ;;  %v769_v60 = vpack.c.bf16 %v367_v59, %v366_v58 }
  0x28   :  { %728 = vmatpush3.bf16.msra.mxu0 %v727_v4 }
  0x29   :  { %729 = vmatprep.subr.bf16.mxu0 %v803_v3 }
  0x2a   :  { %722 = vmatpush3.bf16.msra.mxu1 %v721_v61 }
  0x2b   :  { %747 = vmatprep.subr.bf16.mxu1 %v803_v3 }
  0x2c   :  { %731 = vmatpush3.bf16.msra.mxu0 %v730_v8 }
  0x2d   :  { %732 = vmatprep.subr.bf16.mxu0 %v803_v3 }
  0x30   :  { %734 = vmatpush3.bf16.msra.mxu0 %v733_v11 }
  0x31   :  { %735 = vmatprep.subr.bf16.mxu0 %v803_v3 }
  0x34   :  { %737 = vmatpush3.bf16.msra.mxu0 %v736_v14 }
  0x35   :  { %738 = vmatprep.subr.bf16.mxu0 %v803_v3 }
  0x38   :  { %740 = vmatpush3.bf16.msra.mxu0 %v739_v17 }
  0x39   :  { %741 = vmatprep.subr.bf16.mxu0 %v803_v3 }
  0x3c   :  { %743 = vmatpush3.bf16.msra.mxu0 %v742_v20 }
  0x3d   :  { %744 = vmatprep.subr.bf16.mxu0 %v803_v3 }
  0xf6   :  { %v129_v28 = vpop.f32.mrb[0].mxu0 }
  0xf7   :  { %v130_v29 = vadd.f32 %v461_v27, %v129_v28  ;;  %v569_v30 = vpop.f32.mrb[1].mxu0  ;;  %v463_v27 = vld [vmem:[%s1141_s4] ss:$0 sm:$0xff] }
  0xf8   :  { %v272_v30 = vld [vmem:[%s1144_s7 + $0x70] sm:$0xff] }
  0xf9   :  { %133 = vadd.xlane.f32.xlu0 %v130_v29  ;;  %v745_v32 = vpack.c.bf16 %v273_v31, %v272_v30 }
  0xfb   :  { %746 = vmatpush3.bf16.msra.mxu0 %v745_v32 }
 0x186   :  { %v134_v42 = vpop.xlane.xlu0 %133 }
 0x187   :  { %v135_v43 = vmul.f32 0.03125, %v134_v42  ;;  %v359_v42 = vld [vmem:[%s1146_s9 + $0x38] sm:$0xff] }
 0x189   :  { %v139_v44 = vsub.f32 %v130_v29, %v135_v43  ;;  %v757_v43 = vpack.c.bf16 %v359_v42, %v358_v41 }
 0x18b   :  { %v958_v45 = vsel %vm138_vm1, %v139_v44, 0.0  ;;  %v360_v44 = vld [vmem:[%s1146_s9 + $0x40] sm:$0xff] }
 0x18c   :  { %v141_v46 = vmul.f32 %v958_v45, %v958_v45 }
 0x18e   :  { %142 = vadd.xlane.f32.xlu0 %v141_v46 }
 0x21b   :  { %v143_v21 = vpop.xlane.xlu0 %142 }
 0x21c   :  { %v144_v22 = vmul.f32 0.03125, %v143_v21 }
 0x21e   :  { %v145_v23 = vadd.f32 1e-05, %v144_v22 }
 0x220   :  { %775 = vrsqrt.f32 %v145_v23 }
 0x22a   :  { %v776_v24 = vpop.eup %775 }
 0x22b   :  { %v147_v26 = vmul.f32 %v776_v24, %v958_v45  ;;  %v361_v45 = vld [vmem:[%s1146_s9 + $0x48] sm:$0xff] }
 0x22c   :  { %v760_v46 = vpack.c.bf16 %v361_v45, %v360_v44 }
 0x22d   :  { %v155_v28 = vmul.f32 %v462_v25, %v147_v26 }
 0x22f   :  { %v163_v29 = vadd.f32 %v463_v27, %v155_v28 }
 0x231   :  { %603 = vmatmul.mubr.f32.vlgmr.msra.gmra.mrb[0].mxu1 %v163_v29 }
 0x232   :  { %672 = vmatprep.mubr.msk.f32.mxu1 %vm804_vm0, %v805_v6  ;;  %v354_v6 = vld [vmem:[%s1146_s9 + $0x10] sm:$0xff]  ;;  %749 = vmatpush3.bf16.msra.mxu1 %v748_v35  ;;  %s806_s9 = smov [#allocation2]  }
 0x233   :  { %v751_v37 = vpack.c.bf16 %v355_v36, %v354_v6  ;;  %750 = vmatprep.subr.bf16.mxu1 %v803_v3  ;;  %s453_s2 = sshll.u32 %s806_s9, 4  ;;  %s454_s2 = int_to_ptr.vmem [resolvable:$true] %s453_s2 }
 0x234   :  { %s779_s21 = scalar_lea.vmem %s454_s2, 128  ;;  %p784_p1 = scmp.lt.s32.totalorder %s454_s2, %s454_s2 }
 0x235   :  { %p780_p0 = scmp.ne.s32.totalorder %s454_s2, %s779_s21  ;;  %p785_p2 = scmp.lt.s32.totalorder %s779_s21, %s779_s21 }
 0x236   :  { %752 = vmatpush3.bf16.msra.mxu1 %v751_v37 }
 0x237   :  { %753 = vmatprep.subr.bf16.mxu1 %v803_v3  ;;  %p786_p3 = por %p785_p2, %p784_p1 }
 0x239   :  { %p787_p4 = pnand %p786_p3, %p780_p0 }
 0x23a   :  { %755 = vmatpush3.bf16.msra.mxu1 %v754_v40 }
 0x23b   :  { %756 = vmatprep.subr.bf16.mxu1 %v803_v3 }
 0x23e   :  { %758 = vmatpush3.bf16.msra.mxu1 %v757_v43 }
 0x23f   :  { %759 = vmatprep.subr.bf16.mxu1 %v803_v3 }
 0x242   :  { %761 = vmatpush3.bf16.msra.mxu1 %v760_v46 }
 0x243   :  { %762 = vmatprep.subr.bf16.mxu1 %v803_v3 }
 0x246   :  { %764 = vmatpush3.bf16.msra.mxu1 %v763_v49 }
 0x247   :  { %765 = vmatprep.subr.bf16.mxu1 %v803_v3 }
 0x24a   :  { %767 = vmatpush3.bf16.msra.mxu1 %v766_v52 }
 0x24b   :  { %768 = vmatprep.subr.bf16.mxu1 %v803_v3  ;;  %v465_v3 = vld [vmem:[%s1145_s8] ss:$0 sm:$0xff] }
 0x24e   :  { %770 = vmatpush3.bf16.msra.mxu1 %v769_v60 }
 0x304   :  { %v253_v54 = vpop.f32.mrb[0].mxu1 }
 0x305   :  { %v254_v55 = vadd.f32 %v464_v53, %v253_v54  ;;  %v604_v56 = vpop.f32.mrb[1].mxu1 }
 0x307   :  { %v257_v57 = vmax.f32 %v254_v55, 0.0 }
 0x309   :  { %638 = vmatmul.mubr.f32.vlgmr.msra.gmra.mrb[2].mxu0 %v257_v57 }
 0x3dc   :  { %v347_v61 = vpop.f32.mrb[2].mxu0 }
 0x3dd   :  { %v348_v62 = vadd.f32 %v465_v3, %v347_v61  ;;  %v639_v63 = vpop.f32.mrb[3].mxu0 }
 0x3df   :  { %v351_v0 = vmax.f32 %v348_v62, 0.0 }
 0x3e1   :  { %673 = vmatmul.mubr.f32.vlgmr.msra.gmra.mrb[2].mxu1 %v351_v0 }
 0x4b4   :  { %v441_v2 = vpop.f32.mrb[2].mxu1 }
 0x4b5   :  { %v442_v4 = vadd.f32 %v466_v1, %v441_v2  ;;  %v674_v5 = vpop.f32.mrb[3].mxu1 }
 0x4b7   :  { %777 = vtanh.f32 %v442_v4 }
 0x4c1   :  { %v778_v7 = vpop.eup %777 }
 0x4c2   :  { %446 = vst [vmem:[#allocation2] sm:$0xff] %v778_v7 }
 0x4c3   :  { %790 = shalt.err (!%p787_p4)
}
 0x4c4   :  { %s791_s10 = scalar_lea.hbm %s1148_s11, 128 }
 0x4c5   :  { %p792_p5 = scmp.ne.s32.totalorder %s1148_s11, %s791_s10  ;;  %p795_p6 = scmp.lt.u32.totalorder %s791_s10, %s1148_s11 }
 0x4c7   :  { %p797_p7 = pnand %p795_p6, %p792_p5 }
 0x4c9   :  { %800 = shalt.err (!%p797_p7)
}
 0x4ca   :  { %456 = dma.vmem_to_hbm [thread:$0]  %s454_s2, 128, %s1148_s11, [#allocation3]  }
 0x4cb   :  { %801 = dma.done.wait [#allocation3], 128  }
 0x4cc   :  { %802 = vsyncadd [#allocation3], 4294967168 }
 0x4cd   :  { %460 = vsyncpa [#allocation3], 1 }

</bundles_post_ra>
